<compile_context>
chip_gen: v7x
topology: tpu7x:2x2x1
jax: 0.10.0
libtpu: 0.0.40
codegen_flags: <defaults>
</compile_context>

<pallas_src>
from collections import OrderedDict

import numpy as np

import jax
import jax.numpy as jnp
from jax import lax
from jax.experimental import pallas as pl
from jax.experimental.pallas import tpu as pltpu

LANES = 128           # TPU lane width
SUBLANES = 8          # f32 sublane packing
MAX_TILE_ROWS = 2048  # rows per grid step (2048*128*4B = 1 MiB per x block)


def _round_up(x, m):
    return ((x + m - 1) // m) * m


# ---------------------------------------------------------------------------
# Pallas kernel: weighted segmented sum (the _parse_losses hot path).
#   x_ref   : (tile_r, 128)  f32  packed loss data (zero padded)
#   seg_ref : (1, tile_r)    i32  group id of each row (loss-dict key index)
#   w_ref   : (1, tile_r)    f32  per-row weight (1 / tensor numel)
#   o_ref   : (G_pad, 1)     f32  per-group weighted sums (written last step)
#   acc_ref : (G_pad, 128)   f32  VMEM scratch accumulator
# grid = (num_row_tiles,) -- pure reduction axis ("arbitrary").
# ---------------------------------------------------------------------------
def _make_segmented_sum_kernel(tile_r, n_groups_pad):
    def kernel(x_ref, seg_ref, w_ref, o_ref, acc_ref):
        # Init the accumulator on the first grid step.  NOTE: program_id is
        # only used in the condition (top level), never inside the when body.
        @pl.when(pl.program_id(0) == 0)
        def _init():
            acc_ref[...] = jnp.zeros_like(acc_ref)

        seg = seg_ref[...]                                    # (1, tile_r) i32
        w = w_ref[...]                                        # (1, tile_r) f32
        # Transposed, lane-dense one-hot: weights[g, r] = 1/numel if row r
        # belongs to group g else 0.  Padding rows carry an out-of-range id
        # AND weight 0 (both guards kept).
        gids = lax.broadcasted_iota(jnp.int32, (n_groups_pad, tile_r), 0)
        weights = jnp.where(seg == gids, w, 0.0)              # (G_pad, tile_r)
        # (G_pad, tile_r) @ (tile_r, 128) -> (G_pad, 128) on the MXU,
        # accumulated across row tiles in VMEM scratch.
        acc_ref[...] += lax.dot_general(
            weights, x_ref[...],
            dimension_numbers=(((1,), (0,)), ((), ())),
            preferred_element_type=jnp.float32)

        # Fold the tiny lane reduction into the last grid step so only
        # (G_pad, 1) leaves the kernel (no extra XLA launch / HBM round trip).
        @pl.when(pl.program_id(0) == pl.num_programs(0) - 1)
        def _finalize():
            o_ref[...] = jnp.sum(acc_ref[...], axis=-1, keepdims=True)

    return kernel


def pallas_weighted_segment_sums(data, seg_ids, weights, n_groups_pad, tile_r):
    """data (R,128) f32, seg_ids (1,R) i32, weights (1,R) f32 -> (G_pad,)."""
    rows = data.shape[0]
    assert rows % tile_r == 0 and data.shape[1] == LANES
    assert seg_ids.shape == (1, rows) and weights.shape == (1, rows)
    grid = (rows // tile_r,)

    out = pl.pallas_call(
        _make_segmented_sum_kernel(tile_r, n_groups_pad),
        out_shape=jax.ShapeDtypeStruct((n_groups_pad, 1), jnp.float32),
        grid=grid,
        in_specs=[
            pl.BlockSpec((tile_r, LANES), lambda j: (j, 0)),
            pl.BlockSpec((1, tile_r), lambda j: (0, j)),
            pl.BlockSpec((1, tile_r), lambda j: (0, j)),
        ],
        out_specs=pl.BlockSpec((n_groups_pad, 1), lambda j: (0, 0)),
        scratch_shapes=[pltpu.VMEM((n_groups_pad, LANES), jnp.float32)],
        compiler_params=pltpu.CompilerParams(
            dimension_semantics=("arbitrary",)),
    )(data, seg_ids, weights)
    return out[:, 0]   # (G_pad,) per-group values (sum of member means)


# ---------------------------------------------------------------------------
# BaseDetector ported to JAX + Pallas.
# ---------------------------------------------------------------------------
class BaseDetectorPallas:
    """JAX/Pallas port of mmdet BaseDetector (abstract detector base)."""

    def __init__(self):
        # BaseDetector has no learnable parameters; only a flag.
        self.fp16_enabled = False

    @property
    def with_neck(self):
        return hasattr(self, "neck") and self.neck is not None

    # ---- forward_train: metadata stamping only (matches the PyTorch base). --
    def forward_train(self, imgs, img_metas, **kwargs):
        batch_input_shape = tuple(int(d) for d in imgs[0].shape[-2:])
        for img_meta in img_metas:
            img_meta["batch_input_shape"] = batch_input_shape
        # Concrete detectors would run backbone/neck/head here and return losses.
        return None

    def forward_test(self, imgs, img_metas, **kwargs):
        for var, name in [(imgs, "imgs"), (img_metas, "img_metas")]:
            if not isinstance(var, list):
                raise TypeError(f"{name} must be a list, but got {type(var)}")
        if len(imgs) != len(img_metas):
            raise ValueError("num of augmentations mismatch")
        for img, img_meta in zip(imgs, img_metas):
            for m in img_meta:
                m["batch_input_shape"] = tuple(int(d) for d in img.shape[-2:])
        # TODO(synk): simple_test/aug_test/async_simple_test are abstract in
        # BaseDetector; nothing to run here.
        return None

    def forward(self, img, img_metas, return_loss=True, **kwargs):
        if return_loss:
            return self.forward_train(img, img_metas, **kwargs)
        return self.forward_test(img, img_metas, **kwargs)

    def init_weights(self, pretrained=None):
        # No parameters in the base class; nothing to initialize.
        return None

    # ---- _parse_losses: the numeric path, reduction done in Pallas. ---------
    def _parse_losses(self, losses):
        if not losses:
            raise ValueError("losses dict is empty")

        group_names = list(losses.keys())
        tensors = []  # (group_idx, flat f32 array)
        for g, (loss_name, loss_value) in enumerate(losses.items()):
            if isinstance(loss_value, jnp.ndarray):
                members = [loss_value]
            elif isinstance(loss_value, list):
                members = loss_value
            else:
                raise TypeError(
                    f"{loss_name} is not a tensor or list of tensors")
            for t in members:
                if t.size == 0:
                    raise ValueError(f"{loss_name} contains an empty tensor")
                tensors.append((g, jnp.ravel(t).astype(jnp.float32)))

        n_groups = len(group_names)
        # Minimum sublane padding only; do NOT pad G further (kernel is
        # HBM-bound on x, extra groups only add dead one-hot rows).
        n_groups_pad = max(_round_up(n_groups, SUBLANES), SUBLANES)

        # Dense packing: each tensor pads only to the next 128-lane row.
        data_chunks, seg_cols, w_cols = [], [], []
        for g, flat in tensors:
            n = flat.size
            rows_t = -(-n // LANES)
            data_chunks.append(jnp.pad(flat, (0, rows_t * LANES - n)))
            seg_cols.append(np.full((rows_t,), g, dtype=np.int32))
            w_cols.append(np.full((rows_t,), 1.0 / n, dtype=np.float32))

        rows_data = sum(c.size // LANES for c in data_chunks)
        rows_min = _round_up(rows_data, LANES)  # lane-major seg/w need x128
        if rows_min <= MAX_TILE_ROWS:
            tile_r = rows_min
            rows_pad = rows_min
        else:
            tile_r = MAX_TILE_ROWS
            rows_pad = _round_up(rows_data, tile_r)
        pad_rows = rows_pad - rows_data

        # Trailing pad rows: zero data, out-of-range group id, zero weight.
        data_chunks.append(jnp.zeros((pad_rows * LANES,), jnp.float32))
        seg_cols.append(np.full((pad_rows,), n_groups_pad, dtype=np.int32))
        w_cols.append(np.zeros((pad_rows,), dtype=np.float32))

        data = jnp.concatenate(data_chunks).reshape(rows_pad, LANES)
        seg = jnp.asarray(np.concatenate(seg_cols)).reshape(1, rows_pad)
        w = jnp.asarray(np.concatenate(w_cols)).reshape(1, rows_pad)

        # Pallas segmented reduction: per-group sum of member means.
        group_sums = pallas_weighted_segment_sums(
            data, seg, w, n_groups_pad, tile_r)
        group_vals = group_sums[:n_groups]                       # (G,)

        loss_mask = jnp.asarray(
            np.array([1.0 if "loss" in k else 0.0 for k in group_names],
                     np.float32))
        loss = jnp.sum(group_vals * loss_mask)

        # Return DEVICE arrays: no blocking per-step device_get here (the host
        # sync costs more wall time than the kernel and blocks the next step).
        log_vars = OrderedDict(
            (name, group_vals[i]) for i, name in enumerate(group_names))
        log_vars["loss"] = loss

        # TODO(synk): torch.distributed all_reduce / world-size averaging has
        # no single-host Pallas equivalent; skipped.
        return loss, log_vars

    def train_step(self, data, optimizer=None):
        # BaseDetector.forward_train returns no losses (abstract); for the
        # train_step contract we accept precomputed raw losses in `data`.
        self.forward(data["img"], data["img_metas"], return_loss=True)
        losses = data["losses"]
        loss, log_vars = self._parse_losses(losses)
        return dict(loss=loss, log_vars=log_vars,
                    num_samples=len(data["img_metas"]))


# ---------------------------------------------------------------------------
# Demo / correctness check.
# ---------------------------------------------------------------------------
if __name__ == "__main__":
    key = jax.random.PRNGKey(0)
    k1, k2, k3, k4, k5 = jax.random.split(key, 5)

    # layout: img is NCHW (B=2, C=4, H=16, W=16), matching PyTorch.
    img = jax.random.normal(k1, (2, 4, 16, 16), jnp.float32)
    img_metas = [{"img_shape": (16, 16, 4), "scale_factor": 1.0, "flip": False}
                 for _ in range(2)]

    # Synthetic raw losses (what a concrete detector head would produce).
    losses = OrderedDict(
        loss_cls=jax.random.normal(k2, (2, 80), jnp.float32) ** 2,
        loss_bbox=jax.random.normal(k3, (2, 4, 16, 16), jnp.float32) ** 2,
        loss_aux=[jax.random.normal(k4, (8, 32), jnp.float32) ** 2,
                  jax.random.normal(k5, (2, 16), jnp.float32) ** 2],
        acc=jnp.array([87.5], jnp.float32),
    )

    det = BaseDetectorPallas()
    outputs = det.train_step(
        dict(img=img, img_metas=img_metas, losses=losses))
    loss = jax.block_until_ready(outputs["loss"])

    # forward_train metadata semantics check.
    assert img_metas[0]["batch_input_shape"] == (16, 16)
    assert outputs["num_samples"] == 2

    # Single batched device->host readback for verification (done here at the
    # "logging" boundary, not per step inside the module).
    names = list(outputs["log_vars"].keys())
    host_vals = np.asarray(jax.device_get(
        jnp.stack([outputs["log_vars"][n] for n in names])))
    log_vars_host = OrderedDict(
        (n, float(host_vals[i])) for i, n in enumerate(names))

    # Pure-JAX reference for _parse_losses.
    ref_log = OrderedDict()
    for name, val in losses.items():
        if isinstance(val, list):
            ref_log[name] = sum(jnp.mean(v) for v in val)
        else:
            ref_log[name] = jnp.mean(val)
    ref_loss = sum(v for k, v in ref_log.items() if "loss" in k)

    assert abs(float(loss) - float(ref_loss)) < 1e-4, (float(loss),
                                                       float(ref_loss))
    for name in ref_log:
        assert abs(log_vars_host[name] - float(ref_log[name])) < 1e-4, name

    print("KERNEL_OK")
</pallas_src>

<mosaic_0001>
module attributes {stable_mosaic.version = 11 : i64} {
  func.func @kernel(%arg0: i32, %arg1: memref<128x128xf32, #tpu.memory_space<vmem>>, %arg2: memref<1x128xi32, #tpu.memory_space<vmem>>, %arg3: memref<1x128xf32, #tpu.memory_space<vmem>>, %arg4: memref<8x1xf32, #tpu.memory_space<vmem>>, %arg5: memref<8x128xf32, #tpu.memory_space<vmem>>) attributes {dimension_semantics = [#tpu.dimension_semantics<arbitrary>], iteration_bounds = array<i64: 1>, scalar_prefetch = 0 : i64, scratch_operands = 1 : i64, tpu.core_type = #tpu.core_type<tc>, window_params = [{transform_indices = @transform_0, window_bounds = array<i64: 128, 128>}, {transform_indices = @transform_1, window_bounds = array<i64: 1, 128>}, {transform_indices = @transform_2, window_bounds = array<i64: 1, 128>}, {pipeline_mode = #tpu.pipeline_mode<synchronous>, transform_indices = @transform_3, window_bounds = array<i64: 8, 1>}]} {
    %c0_i32 = arith.constant 0 : i32
    %0 = arith.cmpi eq, %arg0, %c0_i32 : i32
    %1 = arith.extui %0 : i1 to i32
    %c0_i32_0 = arith.constant 0 : i32
    %2 = arith.cmpi ne, %1, %c0_i32_0 : i32
    scf.if %2 {
      %cst_13 = arith.constant 0.000000e+00 : f32
      %20 = vector.broadcast %cst_13 : f32 to vector<8x128xf32>
      %c0_14 = arith.constant 0 : index
      %c0_15 = arith.constant 0 : index
      %21 = vector.load %arg5[%c0_14, %c0_15] : memref<8x128xf32, #tpu.memory_space<vmem>>, vector<8x128xf32>
      tpu.vector_store %arg5[%c0_14, %c0_15], %20 {strides = array<i32>} : memref<8x128xf32, #tpu.memory_space<vmem>>, vector<8x128xf32>,
    } else {
    }
    %c0 = arith.constant 0 : index
    %c0_1 = arith.constant 0 : index
    %3 = vector.load %arg2[%c0, %c0_1] : memref<1x128xi32, #tpu.memory_space<vmem>>, vector<1x128xi32>
    %c0_2 = arith.constant 0 : index
    %c0_3 = arith.constant 0 : index
    %4 = vector.load %arg3[%c0_2, %c0_3] : memref<1x128xf32, #tpu.memory_space<vmem>>, vector<1x128xf32>
    %5 = tpu.iota {dimensions = array<i32: 0>} : vector<8x128xi32>
    %6 = vector.broadcast %3 : vector<1x128xi32> to vector<8x128xi32>
    %7 = arith.cmpi eq, %6, %5 : vector<8x128xi32>
    %cst = arith.constant 0.000000e+00 : f32
    %8 = vector.shape_cast %4 : vector<1x128xf32> to vector<1x128xf32>
    %9 = vector.broadcast %8 : vector<1x128xf32> to vector<8x128xf32>
    %10 = vector.broadcast %cst : f32 to vector<8x128xf32>
    %11 = arith.select %7, %9, %10 : vector<8x128xi1>, vector<8x128xf32>
    %c0_4 = arith.constant 0 : index
    %c0_5 = arith.constant 0 : index
    %12 = vector.load %arg5[%c0_4, %c0_5] : memref<8x128xf32, #tpu.memory_space<vmem>>, vector<8x128xf32>
    %c0_6 = arith.constant 0 : index
    %c0_7 = arith.constant 0 : index
    %13 = vector.load %arg1[%c0_6, %c0_7] : memref<128x128xf32, #tpu.memory_space<vmem>>, vector<128x128xf32>
    %cst_8 = arith.constant dense<0.000000e+00> : vector<8x128xf32>
    %14 = tpu.matmul %11, %13, %cst_8 {dimension_numbers = #tpu.dot_dimension_numbers<[1], [0], [0], [1], [0, 0, 1, 1], [], []>} : vector<8x128xf32>, vector<128x128xf32>, vector<8x128xf32> -> vector<8x128xf32>
    %15 = arith.addf %12, %14 : vector<8x128xf32>
    %c0_9 = arith.constant 0 : index
    %c0_10 = arith.constant 0 : index
    %16 = vector.load %arg5[%c0_9, %c0_10] : memref<8x128xf32, #tpu.memory_space<vmem>>, vector<8x128xf32>
    tpu.vector_store %arg5[%c0_9, %c0_10], %15 {strides = array<i32>} : memref<8x128xf32, #tpu.memory_space<vmem>>, vector<8x128xf32>,
    %c0_i32_11 = arith.constant 0 : i32
    %17 = arith.cmpi eq, %arg0, %c0_i32_11 : i32
    %18 = arith.extui %17 : i1 to i32
    %c0_i32_12 = arith.constant 0 : i32
    %19 = arith.cmpi ne, %18, %c0_i32_12 : i32
    scf.if %19 {
      %c0_13 = arith.constant 0 : index
      %c0_14 = arith.constant 0 : index
      %20 = vector.load %arg5[%c0_13, %c0_14] : memref<8x128xf32, #tpu.memory_space<vmem>>, vector<8x128xf32>
      %cst_15 = arith.constant dense<0.000000e+00> : vector<8xf32>
      %21 = vector.multi_reduction <add>, %20, %cst_15 [1] : vector<8x128xf32> to vector<8xf32>
      %22 = vector.shape_cast %21 : vector<8xf32> to vector<8x1xf32>
      %c0_16 = arith.constant 0 : index
      %c0_17 = arith.constant 0 : index
      %23 = vector.load %arg4[%c0_16, %c0_17] : memref<8x1xf32, #tpu.memory_space<vmem>>, vector<8x1xf32>
      tpu.vector_store %arg4[%c0_16, %c0_17], %22 {strides = array<i32>} : memref<8x1xf32, #tpu.memory_space<vmem>>, vector<8x1xf32>,
    } else {
    }
    return
  }
  func.func @transform_0(%arg0: i32) -> (i32, i32) {
    %c0_i32 = arith.constant 0 : i32
    %c0_i32_0 = arith.constant 0 : i32
    return %arg0, %c0_i32 : i32, i32
  }
  func.func @transform_1(%arg0: i32) -> (i32, i32) {
    %c0_i32 = arith.constant 0 : i32
    %c0_i32_0 = arith.constant 0 : i32
    return %c0_i32, %arg0 : i32, i32
  }
  func.func @transform_2(%arg0: i32) -> (i32, i32) {
    %c0_i32 = arith.constant 0 : i32
    %c0_i32_0 = arith.constant 0 : i32
    return %c0_i32, %arg0 : i32, i32
  }
  func.func @transform_3(%arg0: i32) -> (i32, i32) {
    %c0_i32 = arith.constant 0 : i32
    %c0_i32_0 = arith.constant 0 : i32
    %c0_i32_1 = arith.constant 0 : i32
    return %c0_i32, %c0_i32_0 : i32, i32
  }
}

</mosaic_0001>

<bundles_post_ra>
// kernel: tpu_custom_call.1
= control target key start
LH: loop header
LB: loop body
LE: loop exit
PB: predicated region body
PF: predicated region fallthrough
CT: control target
= control target key end

     0   :  { %8 = vsyncpa [#allocation4], 0  ;;  %s260_s12 = smov [#allocation3]   ;;  %s307_s0 = inlined_call_operand.hbm [shape: f32[128,128], index: 0, kind: input, shape index: {}]   ;;  %s308_s1 = inlined_call_operand.vmem [shape: s32[1,128], index: 1, kind: input, shape index: {}]   ;;  %s309_s2 = inlined_call_operand.vmem [shape: f32[1,128], index: 2, kind: input, shape index: {}]   ;;  %s310_s3 = inlined_call_operand.vmem [shape: f32[8,1], index: 3, kind: output, shape index: {}]  }
   0x1   :  { %s14_s13 = sshll.u32 %s260_s12, 4  ;;  %s236_s16 = scalar_lea.hbm %s307_s0, 2048  ;;  %s15_s13 = int_to_ptr.vmem [resolvable:$true] %s14_s13 }
   0x2   :  { %p237_p0 = scmp.ne.s32.totalorder %s307_s0, %s236_s16  ;;  %p240_p1 = scmp.lt.u32.totalorder %s236_s16, %s307_s0 }
   0x4   :  { %p242_p2 = pnand %p240_p1, %p237_p0 }
   0x6   :  { %245 = shalt.err (!%p242_p2)
}
   0x7   :  { %s246_s21 = scalar_lea.vmem %s15_s13, 2048  ;;  %p251_p4 = scmp.lt.s32.totalorder %s15_s13, %s15_s13 }
   0x8   :  { %p247_p3 = scmp.ne.s32.totalorder %s15_s13, %s246_s21  ;;  %p252_p5 = scmp.lt.s32.totalorder %s246_s21, %s246_s21 }
   0xa   :  { %p253_p6 = por %p252_p5, %p251_p4 }
   0xc   :  { %p254_p7 = pnand %p253_p6, %p247_p3 }
   0xe   :  { %257 = shalt.err (!%p254_p7)
}
   0xf   :  { %s261_s22 = smov 128   ;;  %s262_s23 = smov 8  }
  0x10   :  { %20 = dma.hbm_to_vmem [thread:$0]  %s307_s0, 2048, %s15_s13, [#allocation4], %s261_s22, %s261_s22, %s262_s23  }
  0x11   :  { %258 = dma.done.wait [#allocation4], 2048  }
  0x12   :  { %259 = vsyncadd [#allocation4], 4294965248  ;;  %v263_v0 = vmov 0.0|0.0   ;;  %vm264_vm0 = vmmov 0   ;;  %v265_v1 = vmov 0.0   ;;  %v50_v2 = vld [vmem:[#allocation3] sm:$0xff]  ;;  %v35_v23 = vlaneseq }
  0x13   :  { %206 = vmatprep.subr.bf16.mxu0 %v263_v0  ;;  %203 = vmatprep.mubr.msk.f32.mxu0 %vm264_vm0, %v265_v1  ;;  %v51_v3 = vld [vmem:[#allocation3 + $0x8] sm:$0xff]  ;;  %v52_v4 = vld [vmem:[#allocation3 + $0x10] sm:$0xff]  ;;  %v53_v6 = vld [vmem:[#allocation3 + $0x18] sm:$0xff]  ;;  %vm144_vm2 = vcmask 7168  }
  0x14   :  { %v207_v5 = vpack.c.bf16 %v51_v3, %v50_v2  ;;  %v210_v7 = vpack.c.bf16 %v53_v6, %v52_v4  ;;  %v54_v8 = vld [vmem:[#allocation3 + $0x20] sm:$0xff]  ;;  %v55_v9 = vld [vmem:[#allocation3 + $0x28] sm:$0xff]  ;;  %v56_v11 = vld [vmem:[#allocation3 + $0x30] sm:$0xff]  ;;  %v36_v27 = vshrl.u32 %v35_v23, 7 }
  0x15   :  { %v213_v10 = vpack.c.bf16 %v55_v9, %v54_v8  ;;  %v57_v12 = vld [vmem:[#allocation3 + $0x38] sm:$0xff]  ;;  %v58_v14 = vld [vmem:[#allocation3 + $0x40] sm:$0xff]  ;;  %v59_v15 = vld [vmem:[#allocation3 + $0x48] sm:$0xff] }
  0x16   :  { %208 = vmatpush3.bf16.msra.mxu0 %v207_v5  ;;  %v216_v13 = vpack.c.bf16 %v57_v12, %v56_v11  ;;  %v219_v16 = vpack.c.bf16 %v59_v15, %v58_v14  ;;  %v60_v17 = vld [vmem:[#allocation3 + $0x50] sm:$0xff]  ;;  %v61_v18 = vld [vmem:[#allocation3 + $0x58] sm:$0xff]  ;;  %v62_v20 = vld [vmem:[#allocation3 + $0x60] sm:$0xff] }
  0x17   :  { %209 = vmatprep.subr.bf16.mxu0 %v263_v0  ;;  %v222_v19 = vpack.c.bf16 %v61_v18, %v60_v17  ;;  %v63_v21 = vld [vmem:[#allocation3 + $0x68] sm:$0xff]  ;;  %v64_v24 = vld [vmem:[#allocation3 + $0x70] sm:$0xff]  ;;  %v65_v25 = vld [vmem:[#allocation3 + $0x78] sm:$0xff] }
  0x18   :  { %v225_v22 = vpack.c.bf16 %v63_v21, %v62_v20  ;;  %v228_v26 = vpack.c.bf16 %v65_v25, %v64_v24  ;;  %v151_v28 = vld [vmem:[%s308_s1] ss:$0 sm:$0xff] }
  0x19   :  { %v152_v29 = vld [vmem:[%s309_s2] ss:$0 sm:$0xff]  ;;  %vm41_vm1 = vcmp.eq.s32.totalorder %v151_v28, %v36_v27 }
  0x1a   :  { %211 = vmatpush3.bf16.msra.mxu0 %v210_v7 }
  0x1b   :  { %212 = vmatprep.subr.bf16.mxu0 %v263_v0 }
  0x1e   :  { %214 = vmatpush3.bf16.msra.mxu0 %v213_v10 }
  0x1f   :  { %215 = vmatprep.subr.bf16.mxu0 %v263_v0 }
  0x22   :  { %217 = vmatpush3.bf16.msra.mxu0 %v216_v13 }
  0x23   :  { %218 = vmatprep.subr.bf16.mxu0 %v263_v0 }
  0x26   :  { %220 = vmatpush3.bf16.msra.mxu0 %v219_v16 }
  0x27   :  { %221 = vmatprep.subr.bf16.mxu0 %v263_v0 }
  0x2a   :  { %223 = vmatpush3.bf16.msra.mxu0 %v222_v19 }
  0x2b   :  { %224 = vmatprep.subr.bf16.mxu0 %v263_v0 }
  0x2e   :  { %226 = vmatpush3.bf16.msra.mxu0 %v225_v22 }
  0x2f   :  { %227 = vmatprep.subr.bf16.mxu0 %v263_v0 }
  0x32   :  { %229 = vmatpush3.bf16.msra.mxu0 %v228_v26 }
  0x35   :  { %204 = vmatmul.mubr.msk.f32.vlgmr.msra.gmra.mrb[0].mxu0 %vm41_vm1, %v152_v29 }
 0x108   :  { %v132_v30 = vpop.f32.mrb[0].mxu0 }
 0x109   :  { %v205_v31 = vpop.f32.mrb[1].mxu0  ;;  %142 = vadd.xlane.f32.xlu0 %v132_v30 }
 0x196   :  { %v143_v32 = vpop.xlane.xlu0 %142 }
 0x197   :  { %145 = vst.msk [vmem:[%s310_s3] sm:$0xff] %vm144_vm2, %v143_v32 }
 0x198   :  { %150 = vsyncpa [#allocation4], 1 }

</bundles_post_ra>
